<compile_context>
chip_gen: v5e
topology: v5e:2x2
jax: 0.10.0
libtpu: 0.0.40
codegen_flags: <defaults>
</compile_context>

<pallas_src>
from functools import partial

import jax
import jax.numpy as jnp
from jax import lax
from jax.experimental import pallas as pl
from jax.experimental.pallas import tpu as pltpu
import numpy as np


def _round_up(x, m):
    return (x + m - 1) // m * m


def _use_bf16_tanh_default():
    """bf16 tanh only where the EUP/VPU have a bf16 path (v6e / v7x)."""
    try:
        kind = jax.devices()[0].device_kind.lower()
    except Exception:
        return False
    return ("v6" in kind) or ("v7" in kind)


def _cfm_euler_kernel(n_steps, use_bf16_tanh,
                      mu_ref, z_ref, mask_ref,
                      wx_ref, wm_ref, bwt_ref,
                      out_ref):
    """One (batch, frame-tile) block per grid step, fully resident in VMEM.

    Block layout is (C, T): features on sublanes, frames on the 128-lane axis,
    so elementwise / tanh / DMA work scales with the true feature count.
    """
    dt = jnp.float32(1.0 / n_steps)            # linspace(0,1,n+1) -> constant dt

    bwt = bwt_ref[...]                          # (Cs, 2): col 0 = bias, col 1 = wt
    b = bwt[:, 0:1]                             # (Cs, 1), lane-broadcast
    wt = bwt[:, 1:2]                            # (Cs, 1)

    mu = mu_ref[0]                              # (Cs, TILE_T) f32
    x0 = z_ref[0].astype(jnp.float32)           # f32 Euler carry
    # dt*mask hoisted once: (1, TILE_T) -> (Cs, TILE_T) sublane broadcast.
    dt_mask = jnp.broadcast_to(mask_ref[0].astype(jnp.float32) * dt, mu.shape)

    wx_bf = wx_ref[...]                         # (Cs, Cs) bf16 (pre-cast in wrapper)
    wm_bf = wm_ref[...]

    # Loop-invariant mu projection + bias (bf16 MXU inputs, f32 accumulation).
    base = jnp.dot(wm_bf, mu.astype(jnp.bfloat16),
                   preferred_element_type=jnp.float32) + b

    def body(step, x):
        t = step.astype(jnp.float32) * dt       # t_span[step], starts at 0
        h = (jnp.dot(wx_bf, x.astype(jnp.bfloat16),
                     preferred_element_type=jnp.float32)
             + base + t * wt)
        if use_bf16_tanh:                        # EUP relief on v6e/v7x
            g = jnp.tanh(h.astype(jnp.bfloat16)).astype(jnp.float32)
        else:                                    # v5e: no bf16 VPU/EUP
            g = jnp.tanh(h)
        return x + dt_mask * g                   # Euler step (mask folded in)

    unroll = True if n_steps <= 16 else 4        # strict serial carry: cap unroll
    x_final = lax.fori_loop(0, n_steps, body, x0, unroll=unroll)
    out_ref[0] = x_final.astype(out_ref.dtype)


@partial(jax.jit, static_argnames=("n_timesteps", "tile_t", "use_bf16_tanh"))
def _basecfm_forward_impl(mu, mask, n_timesteps, temperature, params, key,
                          tile_t, use_bf16_tanh):
    B, C, T = mu.shape
    wx, wm, b, wt = params
    n_steps = int(n_timesteps)

    # Feature dim on sublanes (pad to 16 so both f32 and bf16 tilings are
    # clean); frame dim on lanes, padded to a multiple of the 128-aligned tile.
    Cs = _round_up(C, 16)
    tile_t = max(128, min(int(tile_t), _round_up(T, 128)))
    tile_t = _round_up(tile_t, 128)
    Tp = _round_up(T, tile_t)

    z = (jax.random.normal(key, mu.shape, jnp.float32)
         * jnp.asarray(temperature, dtype=jnp.float32))

    # Zero padding is exact: padded weight rows/cols, bias and wt are zero and
    # padded mask frames are zero, so padded sublanes/lanes never contribute.
    mu_p = jnp.pad(mu.astype(jnp.float32), ((0, 0), (0, Cs - C), (0, Tp - T)))
    z_p = jnp.pad(z, ((0, 0), (0, Cs - C), (0, Tp - T)))
    mask_p = jnp.pad(mask.astype(jnp.float32), ((0, 0), (0, 0), (0, Tp - T)))
    wx_p = jnp.pad(wx.astype(jnp.bfloat16), ((0, Cs - C), (0, Cs - C)))
    wm_p = jnp.pad(wm.astype(jnp.bfloat16), ((0, Cs - C), (0, Cs - C)))
    bwt = jnp.pad(
        jnp.concatenate([b.reshape(C, 1), wt.reshape(C, 1)], axis=1)
        .astype(jnp.float32),
        ((0, Cs - C), (0, 0)))                   # (Cs, 2)

    out_dtype = mu.dtype
    # z is dead after the call; alias it into the output when dtypes line up.
    io_aliases = {1: 0} if out_dtype == jnp.float32 else {}

    out_bytes = B * Cs * Tp * jnp.dtype(out_dtype).itemsize
    cost = pl.CostEstimate(
        flops=2 * B * Tp * Cs * Cs * (n_steps + 1),
        transcendentals=B * Tp * Cs * n_steps,
        bytes_accessed=(4 * 2 * B * Cs * Tp       # mu + z (f32)
                        + 4 * B * Tp              # mask
                        + out_bytes
                        + 2 * 2 * Cs * Cs         # bf16 weights
                        + 4 * 2 * Cs))            # [b; wt]

    kernel = partial(_cfm_euler_kernel, n_steps, use_bf16_tanh)
    out_p = pl.pallas_call(
        kernel,
        out_shape=jax.ShapeDtypeStruct((B, Cs, Tp), out_dtype),
        grid=(B, Tp // tile_t),
        in_specs=[
            pl.BlockSpec((1, Cs, tile_t), lambda i, j: (i, 0, j)),   # mu
            pl.BlockSpec((1, Cs, tile_t), lambda i, j: (i, 0, j)),   # z
            pl.BlockSpec((1, 1, tile_t), lambda i, j: (i, 0, j)),    # mask
            pl.BlockSpec((Cs, Cs), lambda i, j: (0, 0)),             # Wx (bf16)
            pl.BlockSpec((Cs, Cs), lambda i, j: (0, 0)),             # Wm (bf16)
            pl.BlockSpec((Cs, 2), lambda i, j: (0, 0)),              # [b; wt]
        ],
        out_specs=pl.BlockSpec((1, Cs, tile_t), lambda i, j: (i, 0, j)),
        input_output_aliases=io_aliases,
        compiler_params=pltpu.CompilerParams(
            dimension_semantics=("parallel", "parallel")),
        cost_estimate=cost,
    )(mu_p, z_p, mask_p, wx_p, wm_p, bwt)

    return out_p[:, :C, :T]


def basecfm_forward(mu, mask, n_timesteps, temperature, params, key, *,
                    tile_t=1024):
    """JAX equivalent of BASECFM.forward (returns sol[-1]). mu: (B, C, T)."""
    return _basecfm_forward_impl(mu, mask, int(n_timesteps), temperature,
                                 params, key, tile_t=int(tile_t),
                                 use_bf16_tanh=_use_bf16_tanh_default())


def _reference_forward(mu, mask, n_timesteps, temperature, params, key,
                       use_bf16_tanh):
    """Pure-JAX replica of solve_euler with the same synthetic estimator and
    the same precision choices (bf16 MXU inputs / f32 accumulation/carry)."""
    wx, wm, b, wt = params
    z = (jax.random.normal(key, mu.shape, jnp.float32)
         * jnp.float32(temperature))
    n_steps = int(n_timesteps)
    dt = 1.0 / n_steps
    mask = mask.astype(jnp.float32)
    wx_bf = wx.astype(jnp.bfloat16)
    wm_bf = wm.astype(jnp.bfloat16)
    base = jnp.einsum("ij,bjt->bit", wm_bf, mu.astype(jnp.bfloat16),
                      preferred_element_type=jnp.float32) + b[None]
    x = z
    for step in range(n_steps):
        t = step * dt
        h = (jnp.einsum("ij,bjt->bit", wx_bf, x.astype(jnp.bfloat16),
                        preferred_element_type=jnp.float32)
             + base + t * wt[None])
        g = (jnp.tanh(h.astype(jnp.bfloat16)).astype(jnp.float32)
             if use_bf16_tanh else jnp.tanh(h))
        x = x + dt * mask * g
    return x.astype(mu.dtype)


if __name__ == "__main__":
    B, C, T = 2, 16, 64          # batch, n_feats, frames (small demo shapes)
    n_timesteps = 4
    temperature = 1.0

    root = jax.random.PRNGKey(0)
    k_mu, k_wx, k_wm, k_b, k_wt, k_z = jax.random.split(root, 6)

    mu = jax.random.normal(k_mu, (B, C, T), jnp.float32)
    # mask: second batch element padded after frame 40 (shape (B, 1, T))
    frame_ids = jnp.arange(T)[None, None, :]
    valid_len = jnp.array([T, 40])[:, None, None]
    mask = (frame_ids < valid_len).astype(jnp.float32)

    # Deterministic synthetic estimator parameters (BASECFM.estimator is
    # abstract in the reference module; this linear estimator is a stand-in).
    wx = 0.1 * jax.random.normal(k_wx, (C, C), jnp.float32)
    wm = 0.1 * jax.random.normal(k_wm, (C, C), jnp.float32)
    b = 0.05 * jax.random.normal(k_b, (C, 1), jnp.float32)
    wt = 0.05 * jax.random.normal(k_wt, (C, 1), jnp.float32)
    params = (wx, wm, b, wt)

    out = basecfm_forward(mu, mask, n_timesteps=n_timesteps,
                          temperature=temperature, params=params, key=k_z,
                          tile_t=1024)
    out = jax.block_until_ready(out)

    ref = _reference_forward(mu, mask, n_timesteps, temperature, params, k_z,
                             use_bf16_tanh=_use_bf16_tanh_default())
    np.testing.assert_allclose(np.asarray(out), np.asarray(ref),
                               rtol=1e-2, atol=1e-2)
    print("KERNEL_OK")
</pallas_src>

<mosaic_0001>
module attributes {stable_mosaic.version = 11 : i64} {
  func.func @_cfm_euler_kernel(%arg0: i32, %arg1: i32, %arg2: memref<1x16x128xf32, #tpu.memory_space<vmem>>, %arg3: memref<1x16x128xf32, #tpu.memory_space<vmem>>, %arg4: memref<1x1x128xf32, #tpu.memory_space<vmem>>, %arg5: memref<16x16xbf16, #tpu.memory_space<vmem>>, %arg6: memref<16x16xbf16, #tpu.memory_space<vmem>>, %arg7: memref<16x2xf32, #tpu.memory_space<vmem>>, %arg8: memref<1x16x128xf32, #tpu.memory_space<vmem>>) attributes {dimension_semantics = [#tpu.dimension_semantics<parallel>, #tpu.dimension_semantics<parallel>], iteration_bounds = array<i64: 2, 1>, scalar_prefetch = 0 : i64, scratch_operands = 0 : i64, tpu.core_type = #tpu.core_type<tc>, window_params = [{transform_indices = @transform_0, window_bounds = array<i64: 1, 16, 128>}, {transform_indices = @transform_1, window_bounds = array<i64: 1, 16, 128>}, {transform_indices = @transform_2, window_bounds = array<i64: 1, 1, 128>}, {pipeline_mode = #tpu.pipeline_mode<synchronous>, transform_indices = @transform_3, window_bounds = array<i64: 16, 16>}, {pipeline_mode = #tpu.pipeline_mode<synchronous>, transform_indices = @transform_4, window_bounds = array<i64: 16, 16>}, {pipeline_mode = #tpu.pipeline_mode<synchronous>, transform_indices = @transform_5, window_bounds = array<i64: 16, 2>}, {transform_indices = @transform_6, window_bounds = array<i64: 1, 16, 128>}]} {
    %c0 = arith.constant 0 : index
    %c0_0 = arith.constant 0 : index
    %0 = vector.load %arg7[%c0, %c0_0] : memref<16x2xf32, #tpu.memory_space<vmem>>, vector<16x2xf32>
    %1 = vector.extract_strided_slice %0 {offsets = [0, 0], sizes = [16, 1], strides = [1, 1]} : vector<16x2xf32> to vector<16x1xf32>
    %2 = vector.extract_strided_slice %0 {offsets = [0, 1], sizes = [16, 1], strides = [1, 1]} : vector<16x2xf32> to vector<16x1xf32>
    %c0_1 = arith.constant 0 : index
    %c0_2 = arith.constant 0 : index
    %c0_3 = arith.constant 0 : index
    %3 = vector.load %arg2[%c0_1, %c0_2, %c0_3] : memref<1x16x128xf32, #tpu.memory_space<vmem>>, vector<1x16x128xf32>
    %4 = vector.shape_cast %3 : vector<1x16x128xf32> to vector<16x128xf32>
    %c0_4 = arith.constant 0 : index
    %c0_5 = arith.constant 0 : index
    %c0_6 = arith.constant 0 : index
    %5 = vector.load %arg3[%c0_4, %c0_5, %c0_6] : memref<1x16x128xf32, #tpu.memory_space<vmem>>, vector<1x16x128xf32>
    %6 = vector.shape_cast %5 : vector<1x16x128xf32> to vector<16x128xf32>
    %c0_7 = arith.constant 0 : index
    %c0_8 = arith.constant 0 : index
    %c0_9 = arith.constant 0 : index
    %7 = vector.load %arg4[%c0_7, %c0_8, %c0_9] : memref<1x1x128xf32, #tpu.memory_space<vmem>>, vector<1x1x128xf32>
    %8 = vector.shape_cast %7 : vector<1x1x128xf32> to vector<1x128xf32>
    %cst = arith.constant 2.500000e-01 : f32
    %9 = vector.broadcast %cst : f32 to vector<1x128xf32>
    %10 = arith.mulf %8, %9 : vector<1x128xf32>
    %11 = vector.shape_cast %10 : vector<1x128xf32> to vector<1x128xf32>
    %12 = vector.broadcast %11 : vector<1x128xf32> to vector<16x128xf32>
    %c0_10 = arith.constant 0 : index
    %c0_11 = arith.constant 0 : index
    %13 = vector.load %arg5[%c0_10, %c0_11] : memref<16x16xbf16, #tpu.memory_space<vmem>>, vector<16x16xbf16>
    %c0_12 = arith.constant 0 : index
    %c0_13 = arith.constant 0 : index
    %14 = vector.load %arg6[%c0_12, %c0_13] : memref<16x16xbf16, #tpu.memory_space<vmem>>, vector<16x16xbf16>
    %15 = arith.truncf %4 : vector<16x128xf32> to vector<16x128xbf16>
    %cst_14 = arith.constant dense<0.000000e+00> : vector<16x128xf32>
    %16 = tpu.matmul %14, %15, %cst_14 {dimension_numbers = #tpu.dot_dimension_numbers<[1], [0], [0], [1], [0, 0, 1, 1], [], []>} : vector<16x16xbf16>, vector<16x128xbf16>, vector<16x128xf32> -> vector<16x128xf32>
    %17 = vector.broadcast %1 : vector<16x1xf32> to vector<16x128xf32>
    %18 = arith.addf %16, %17 : vector<16x128xf32>
    %cst_15 = arith.constant 2.500000e-01 : f32
    %c0_i32 = arith.constant 0 : i32
    %19 = arith.sitofp %c0_i32 : i32 to f32
    %20 = arith.mulf %19, %cst_15 : f32
    %21 = arith.truncf %6 : vector<16x128xf32> to vector<16x128xbf16>
    %cst_16 = arith.constant dense<0.000000e+00> : vector<16x128xf32>
    %22 = tpu.matmul %13, %21, %cst_16 {dimension_numbers = #tpu.dot_dimension_numbers<[1], [0], [0], [1], [0, 0, 1, 1], [], []>} : vector<16x16xbf16>, vector<16x128xbf16>, vector<16x128xf32> -> vector<16x128xf32>
    %23 = arith.addf %22, %18 : vector<16x128xf32>
    %24 = vector.broadcast %20 : f32 to vector<16x1xf32>
    %25 = arith.mulf %24, %2 : vector<16x1xf32>
    %26 = vector.broadcast %25 : vector<16x1xf32> to vector<16x128xf32>
    %27 = arith.addf %23, %26 : vector<16x128xf32>
    %28 = math.tanh %27 : vector<16x128xf32>
    %29 = arith.mulf %12, %28 : vector<16x128xf32>
    %30 = arith.addf %6, %29 : vector<16x128xf32>
    %c1_i32 = arith.constant 1 : i32
    %31 = arith.sitofp %c1_i32 : i32 to f32
    %32 = arith.mulf %31, %cst_15 : f32
    %33 = arith.truncf %30 : vector<16x128xf32> to vector<16x128xbf16>
    %cst_17 = arith.constant dense<0.000000e+00> : vector<16x128xf32>
    %34 = tpu.matmul %13, %33, %cst_17 {dimension_numbers = #tpu.dot_dimension_numbers<[1], [0], [0], [1], [0, 0, 1, 1], [], []>} : vector<16x16xbf16>, vector<16x128xbf16>, vector<16x128xf32> -> vector<16x128xf32>
    %35 = arith.addf %34, %18 : vector<16x128xf32>
    %36 = vector.broadcast %32 : f32 to vector<16x1xf32>
    %37 = arith.mulf %36, %2 : vector<16x1xf32>
    %38 = vector.broadcast %37 : vector<16x1xf32> to vector<16x128xf32>
    %39 = arith.addf %35, %38 : vector<16x128xf32>
    %40 = math.tanh %39 : vector<16x128xf32>
    %41 = arith.mulf %12, %40 : vector<16x128xf32>
    %42 = arith.addf %30, %41 : vector<16x128xf32>
    %c2_i32 = arith.constant 2 : i32
    %43 = arith.sitofp %c2_i32 : i32 to f32
    %44 = arith.mulf %43, %cst_15 : f32
    %45 = arith.truncf %42 : vector<16x128xf32> to vector<16x128xbf16>
    %cst_18 = arith.constant dense<0.000000e+00> : vector<16x128xf32>
    %46 = tpu.matmul %13, %45, %cst_18 {dimension_numbers = #tpu.dot_dimension_numbers<[1], [0], [0], [1], [0, 0, 1, 1], [], []>} : vector<16x16xbf16>, vector<16x128xbf16>, vector<16x128xf32> -> vector<16x128xf32>
    %47 = arith.addf %46, %18 : vector<16x128xf32>
    %48 = vector.broadcast %44 : f32 to vector<16x1xf32>
    %49 = arith.mulf %48, %2 : vector<16x1xf32>
    %50 = vector.broadcast %49 : vector<16x1xf32> to vector<16x128xf32>
    %51 = arith.addf %47, %50 : vector<16x128xf32>
    %52 = math.tanh %51 : vector<16x128xf32>
    %53 = arith.mulf %12, %52 : vector<16x128xf32>
    %54 = arith.addf %42, %53 : vector<16x128xf32>
    %c3_i32 = arith.constant 3 : i32
    %55 = arith.sitofp %c3_i32 : i32 to f32
    %56 = arith.mulf %55, %cst_15 : f32
    %57 = arith.truncf %54 : vector<16x128xf32> to vector<16x128xbf16>
    %cst_19 = arith.constant dense<0.000000e+00> : vector<16x128xf32>
    %58 = tpu.matmul %13, %57, %cst_19 {dimension_numbers = #tpu.dot_dimension_numbers<[1], [0], [0], [1], [0, 0, 1, 1], [], []>} : vector<16x16xbf16>, vector<16x128xbf16>, vector<16x128xf32> -> vector<16x128xf32>
    %59 = arith.addf %58, %18 : vector<16x128xf32>
    %60 = vector.broadcast %56 : f32 to vector<16x1xf32>
    %61 = arith.mulf %60, %2 : vector<16x1xf32>
    %62 = vector.broadcast %61 : vector<16x1xf32> to vector<16x128xf32>
    %63 = arith.addf %59, %62 : vector<16x128xf32>
    %64 = math.tanh %63 : vector<16x128xf32>
    %65 = arith.mulf %12, %64 : vector<16x128xf32>
    %66 = arith.addf %54, %65 : vector<16x128xf32>
    %c4_i32 = arith.constant 4 : i32
    %c0_20 = arith.constant 0 : index
    %c0_21 = arith.constant 0 : index
    %c0_22 = arith.constant 0 : index
    %67 = vector.load %arg8[%c0_20, %c0_21, %c0_22] : memref<1x16x128xf32, #tpu.memory_space<vmem>>, vector<1x16x128xf32>
    %68 = vector.shape_cast %67 : vector<1x16x128xf32> to vector<16x128xf32>
    %69 = vector.shape_cast %66 : vector<16x128xf32> to vector<1x16x128xf32>
    tpu.vector_store %arg8[%c0_20, %c0_21, %c0_22], %69 {strides = array<i32>} : memref<1x16x128xf32, #tpu.memory_space<vmem>>, vector<1x16x128xf32>,
    return
  }
  func.func @transform_0(%arg0: i32, %arg1: i32) -> (i32, i32, i32) {
    %c0_i32 = arith.constant 0 : i32
    %c0_i32_0 = arith.constant 0 : i32
    return %arg0, %c0_i32, %arg1 : i32, i32, i32
  }
  func.func @transform_1(%arg0: i32, %arg1: i32) -> (i32, i32, i32) {
    %c0_i32 = arith.constant 0 : i32
    %c0_i32_0 = arith.constant 0 : i32
    return %arg0, %c0_i32, %arg1 : i32, i32, i32
  }
  func.func @transform_2(%arg0: i32, %arg1: i32) -> (i32, i32, i32) {
    %c0_i32 = arith.constant 0 : i32
    %c0_i32_0 = arith.constant 0 : i32
    return %arg0, %c0_i32, %arg1 : i32, i32, i32
  }
  func.func @transform_3(%arg0: i32, %arg1: i32) -> (i32, i32) {
    %c0_i32 = arith.constant 0 : i32
    %c0_i32_0 = arith.constant 0 : i32
    %c0_i32_1 = arith.constant 0 : i32
    return %c0_i32, %c0_i32_0 : i32, i32
  }
  func.func @transform_4(%arg0: i32, %arg1: i32) -> (i32, i32) {
    %c0_i32 = arith.constant 0 : i32
    %c0_i32_0 = arith.constant 0 : i32
    %c0_i32_1 = arith.constant 0 : i32
    return %c0_i32, %c0_i32_0 : i32, i32
  }
  func.func @transform_5(%arg0: i32, %arg1: i32) -> (i32, i32) {
    %c0_i32 = arith.constant 0 : i32
    %c0_i32_0 = arith.constant 0 : i32
    %c0_i32_1 = arith.constant 0 : i32
    return %c0_i32, %c0_i32_0 : i32, i32
  }
  func.func @transform_6(%arg0: i32, %arg1: i32) -> (i32, i32, i32) {
    %c0_i32 = arith.constant 0 : i32
    %c0_i32_0 = arith.constant 0 : i32
    return %arg0, %c0_i32, %arg1 : i32, i32, i32
  }
}

</mosaic_0001>

<bundles_post_ra>
// kernel: _basecfm_forward_impl.1
= control target key start
LH: loop header
LB: loop body
LE: loop exit
PB: predicated region body
PF: predicated region fallthrough
CT: control target
= control target key end

     0   :  { %s790_s21 = smov 0   ;;  %s792_s22 = smov 0   ;;  %s890_s0 = inlined_call_operand.vmem [shape: f32[2,16,128], index: 0, kind: input, shape index: {}]   ;;  %s891_s1 = inlined_call_operand.vmem [shape: f32[2,16,128], index: 1, kind: input, shape index: {}, may-alias: {1,6}]   ;;  %s892_s2 = inlined_call_operand.vmem [shape: f32[2,1,128], index: 2, kind: input, shape index: {}]   ;;  %s893_s3 = inlined_call_operand.vmem [shape: bf16[16,16], index: 3, kind: input, shape index: {}]   ;;  %s894_s4 = inlined_call_operand.vmem [shape: bf16[16,16], index: 4, kind: input, shape index: {}]   ;;  %s895_s5 = inlined_call_operand.vmem [shape: f32[16,2], index: 5, kind: input, shape index: {}]   ;;  %s896_s6 = inlined_call_operand.vmem [shape: f32[2,16,128], index: 6, kind: output, shape index: {}, may-alias: {1,6}]  }
   0x1   :  { %s794_s23 = smov 0  }
   0x2 LB: > { %s28_s24 = sadd.s32 1, %s747_s22  ;;  %p656_p0 = scmp.ge.s32.totalorder %s751_s23, 1  ;;  %s751_s23 = sphi %s794_s23, %s16_s23   ;;  %s747_s22 = sphi %s792_s22, %s898_s22   ;;  %s743_s21 = sphi %s790_s21, %s897_s21  }
   0x3   : > { %p30_p1 = scmp.ge.s32.totalorder %s28_s24, 2  ;;  %p259_p2 = scmp.lt.s32.totalorder %s751_s23, 3 }
   0x5   : > { %s900_s24 = smov (%p30_p1, %s28_s24), 0  ;;  %p260_p3 = pnand %p656_p0, %p259_p2 }
   0x6   : > { %p309_p4 = scmp.lt.s32.totalorder (!%p260_p3), %s743_s21, 1 }
   0x7   : > { %263 = sbr.rel (%p260_p3) target bundleno = 647 (0x287), region = 44 }
   0xc   : > { %v811_v0 = vld [vmem:[%s895_s5] sm:$0xff]  ;;  %v753_v1 = vmov 1   ;;  %s902_s21 = smov (!%p309_p4, %s743_s21), 1  ;;  %v754_v3 = vmov 0   ;;  %v341_v4 = vld [vmem:[%s895_s5 + $0x8] sm:$0xff]  ;;  %vm371_vm0 = vcmask 130048  }
   0xd   : > { %710 = vset.pattern.permute.xlu1 %v753_v1  ;;  %v412_v2 = vmul.f32 0.0, %v811_v0  ;;  %711 = vset.pattern.permute.xlu2 %v753_v1  ;;  %s818_s27 = sshll.u32 %s902_s21, 4  ;;  %v413_v10 = vmul.f32 0.0, %v341_v4  ;;  %v682_v12 = vld [vmem:[%s894_s4] sm:$0xff]  ;;  %v483_v14 = vmul.f32 0.5, %v341_v4  ;;  %v518_v15 = vmul.f32 0.75, %v341_v4  ;;  %s330_s18 = scalar_lea.vmem %s892_s2, %s902_s21 }
   0xe   : > { %709 = vset.pattern.permute.xlu0 %v754_v3  ;;  %s316_s8 = scalar_lea.vmem %s890_s0, %s818_s27  ;;  %s324_s11 = scalar_lea.vmem %s891_s1, %s818_s27  ;;  %v837_v13 = vld [vmem:[%s893_s3] sm:$0xff]  ;;  %v447_v17 = vmul.f32 0.25, %v811_v0  ;;  %v448_v23 = vmul.f32 0.25, %v341_v4  ;;  %v517_v34 = vmul.f32 0.75, %v811_v0  ;;  %v482_v43 = vmul.f32 0.5, %v811_v0 }
   0xf   : > { %416 = vperm.xlu1 %710, %v412_v2   ;;  %358 = vperm.xlu0 %709, %v811_v0   ;;  %v342_v5 = vld [vmem:[%s316_s8] sm:$0xff]  ;;  %v343_v6 = vld [vmem:[%s316_s8 + $0x8] sm:$0xff]  ;;  %s338_s21 = scalar_lea.vmem %s896_s6, %s818_s27 }
  0x10   : > { %v355_v7 = vpack.c.bf16 %v343_v6, %v342_v5  ;;  %v344_v8 = vld [vmem:[%s324_s11] sm:$0xff]  ;;  %v345_v9 = vld [vmem:[%s324_s11 + $0x8] sm:$0xff]  ;;  %451 = vperm.xlu2 %711, %v447_v17  }
  0x11   : > { %v389_v11 = vpack.c.bf16 %v345_v9, %v344_v8  ;;  %v346_v27 = vld [vmem:[%s330_s18] sm:$0x1] }
  0x12   : > { %382 = vmatpush.bf16.msra.mxu0 %v355_v7  ;;  %v347_v31 = vmul.f32 0.25, %v346_v27 }
  0x13   : > { %405 = vmatpush.bf16.msra.mxu1 %v389_v11 }
  0x14   : > { %v854_v35 = vperm.slane %v347_v31, 0 }
  0x15   : > { %667 = vmatmul.msk.bf16.vlgmr.msra.gmra.mxu0 %vm371_vm0, %v682_v12 }
  0x16   : > { %672 = vmatmul.msk.bf16.vlgmr.msra.gmra.mxu1 %vm371_vm0, %v837_v13 }
  0x17   : > { %421 = vperm.xlu1 %710, %v413_v10   ;;  %363 = vperm.xlu0 %709, %v341_v4  }
  0x18   : > { %456 = vperm.xlu2 %711, %v448_v23  }
  0x1f   : > { %491 = vperm.xlu1 %710, %v483_v14   ;;  %712 = vset.pattern.permute.xlu0 %v753_v1 }
  0x20   : > { %521 = vperm.xlu2 %711, %v517_v34   ;;  %486 = vperm.xlu0 %712, %v482_v43  }
  0x27   : > { %526 = vperm.xlu1 %710, %v518_v15  }
  0x6a   : > { %v452_v44 = vpop.permute.xlu2 %451 }
  0x72   : > { %v457_v50 = vpop.permute.xlu2 %456 }
  0x7a   : > { %v522_v12 = vpop.permute.xlu2 %521 }
  0x81   : > { %v359_v16 = vpop.permute.xlu0 %358  ;;  %v417_v21 = vpop.permute.xlu1 %416 }
  0x89   : > { %v364_v25 = vpop.permute.xlu0 %363  ;;  %v422_v32 = vpop.permute.xlu1 %421 }
  0x91   : > { %v492_v1 = vpop.permute.xlu1 %491 }
  0x92   : > { %v384_v18 = vpop.f32.mrf.mxu0  ;;  %v487_v61 = vpop.permute.xlu0 %486 }
  0x93   : > { %v843_v19 = vadd.f32 %v384_v18, %v359_v16  ;;  %v407_v20 = vpop.f32.mrf.mxu1 }
  0x95   : > { %v408_v22 = vadd.f32 %v407_v20, %v843_v19 }
  0x97   : > { %v424_v24 = vadd.f32 %v417_v21, %v408_v22 }
  0x99   : > { %713 = vtanh.f32 %v424_v24  ;;  %v527_v17 = vpop.permute.xlu1 %526 }
  0x9a   : > { %v386_v26 = vpop.f32.mrf.mxu0 }
  0x9b   : > { %v850_v28 = vadd.f32 %v386_v26, %v364_v25  ;;  %v409_v29 = vpop.f32.mrf.mxu1 }
  0x9d   : > { %v410_v30 = vadd.f32 %v409_v29, %v850_v28 }
  0x9f   : > { %v425_v33 = vadd.f32 %v422_v32, %v410_v30  ;;  %v714_v36 = vpop.eup %713 }
  0xa0   : > { %v428_v37 = vmul.f32 %v714_v36, %v854_v35 }
  0xa1   : > { %715 = vtanh.f32 %v425_v33 }
  0xa2   : > { %v430_v40 = vadd.f32 %v428_v37, %v344_v8 }
  0xa7   : > { %v716_v38 = vpop.eup %715 }
  0xa8   : > { %v429_v39 = vmul.f32 %v716_v38, %v854_v35 }
  0xaa   : > { %v431_v41 = vadd.f32 %v429_v39, %v345_v9 }
  0xac   : > { %v432_v42 = vpack.c.bf16 %v431_v41, %v430_v40 }
  0xae   : > { %440 = vmatpush.bf16.msra.mxu2 %v432_v42 }
  0xb1   : > { %673 = vmatmul.msk.bf16.vlgmr.msra.gmra.mxu2 %vm371_vm0, %v837_v13 }
 0x134   : > { %v442_v45 = vpop.f32.mrf.mxu2 }
 0x135   : > { %v443_v46 = vadd.f32 %v442_v45, %v843_v19 }
 0x137   : > { %v459_v47 = vadd.f32 %v452_v44, %v443_v46 }
 0x139   : > { %717 = vtanh.f32 %v459_v47 }
 0x13c   : > { %v444_v48 = vpop.f32.mrf.mxu2 }
 0x13d   : > { %v445_v49 = vadd.f32 %v444_v48, %v850_v28 }
 0x13f   : > { %v460_v51 = vadd.f32 %v457_v50, %v445_v49  ;;  %v718_v52 = vpop.eup %717 }
 0x140   : > { %v463_v53 = vmul.f32 %v718_v52, %v854_v35 }
 0x141   : > { %719 = vtanh.f32 %v460_v51 }
 0x142   : > { %v465_v56 = vadd.f32 %v463_v53, %v430_v40 }
 0x147   : > { %v720_v54 = vpop.eup %719 }
 0x148   : > { %v464_v55 = vmul.f32 %v720_v54, %v854_v35 }
 0x14a   : > { %v466_v57 = vadd.f32 %v464_v55, %v431_v41 }
 0x14c   : > { %v467_v58 = vpack.c.bf16 %v466_v57, %v465_v56 }
 0x14e   : > { %475 = vmatpush.bf16.msra.mxu3 %v467_v58 }
 0x151   : > { %674 = vmatmul.msk.bf16.vlgmr.msra.gmra.mxu3 %vm371_vm0, %v837_v13 }
 0x1d4   : > { %v477_v59 = vpop.f32.mrf.mxu3 }
 0x1d5   : > { %v478_v60 = vadd.f32 %v477_v59, %v843_v19 }
 0x1d7   : > { %v494_v62 = vadd.f32 %v487_v61, %v478_v60 }
 0x1d9   : > { %721 = vtanh.f32 %v494_v62 }
 0x1dc   : > { %v479_v63 = vpop.f32.mrf.mxu3 }
 0x1dd   : > { %v480_v0 = vadd.f32 %v479_v63, %v850_v28 }
 0x1df   : > { %v495_v2 = vadd.f32 %v492_v1, %v480_v0  ;;  %v722_v3 = vpop.eup %721 }
 0x1e0   : > { %v498_v4 = vmul.f32 %v722_v3, %v854_v35 }
 0x1e1   : > { %723 = vtanh.f32 %v495_v2 }
 0x1e2   : > { %v500_v7 = vadd.f32 %v498_v4, %v465_v56 }
 0x1e7   : > { %v724_v5 = vpop.eup %723 }
 0x1e8   : > { %v499_v6 = vmul.f32 %v724_v5, %v854_v35 }
 0x1ea   : > { %v501_v8 = vadd.f32 %v499_v6, %v466_v57 }
 0x1ec   : > { %v502_v9 = vpack.c.bf16 %v501_v8, %v500_v7 }
 0x1ee   : > { %510 = vmatpush.bf16.msrb.mxu0 %v502_v9 }
 0x1f1   : > { %675 = vmatmul.msk.bf16.vlgmr.msrb.gmra.mxu0 %vm371_vm0, %v837_v13 }
 0x26e   : > { %v512_v10 = vpop.f32.mrf.mxu0 }
 0x26f   : > { %v513_v11 = vadd.f32 %v512_v10, %v843_v19 }
 0x271   : > { %v529_v14 = vadd.f32 %v522_v12, %v513_v11 }
 0x273   : > { %725 = vtanh.f32 %v529_v14 }
 0x276   : > { %v514_v15 = vpop.f32.mrf.mxu0 }
 0x277   : > { %v515_v16 = vadd.f32 %v514_v15, %v850_v28 }
 0x279   : > { %v726_v18 = vpop.eup %725  ;;  %v530_v20 = vadd.f32 %v527_v17, %v515_v16 }
 0x27a   : > { %v533_v21 = vmul.f32 %v726_v18, %v854_v35 }
 0x27b   : > { %727 = vtanh.f32 %v530_v20 }
 0x27c   : > { %v535_v13 = vadd.f32 %v533_v21, %v500_v7 }
 0x27e   : > { %537 = vst [vmem:[%s338_s21] sm:$0xff] %v535_v13 }
 0x281   : > { %v728_v22 = vpop.eup %727 }
 0x282   : > { %v534_v19 = vmul.f32 %v728_v22, %v854_v35 }
 0x284   : > { %v536_v23 = vadd.f32 %v534_v19, %v501_v8 }
 0x286   : > { %538 = vst [vmem:[%s338_s21 + $0x8] sm:$0xff] %v536_v23 }
 0x287 PF: > { %s16_s23 = sadd.s32 1, %s751_s23   ;;  %s897_s21 = smov %s747_s22 }
 0x288   : > { %p13_p5 = scmp.ge.s32.totalorder %s16_s23, 4   ;;  %s898_s22 = smov %s900_s24 }
 0x28a   :  { %15 = sbr.rel (!%p13_p5) target bundleno = 2 (0x2), region = 80 }

</bundles_post_ra>
